<compile_context>
chip_gen: v7x
topology: tpu7x:2x2x1
jax: 0.10.0
libtpu: 0.0.40
codegen_flags: <defaults>
</compile_context>

<pallas_src>
import functools

import jax
import jax.numpy as jnp
from jax.experimental import pallas as pl
from jax.experimental.pallas import tpu as pltpu

LATENT = 2
HIDDEN = 768   # BERT hidden size (module hard-codes Linear(768, 128))
D1 = 128
D2 = 32
NPAD = 128     # lane-dense padding for the 32-wide and latent-wide dims


def _round_up(x, m):
    return (x + m - 1) // m * m


def text_encoder_kernel(x_ref, w1_ref, b1_ref, w2_ref, b2_ref, w3_ref, b3_ref,
                        o_ref, acc_ref):
    s = pl.program_id(1)

    @pl.when(s == 0)
    def _():
        acc_ref[...] = jnp.zeros_like(acc_ref)

    # Sequence-sum accumulated in f32 (x is streamed as bf16).
    acc_ref[...] += jnp.sum(x_ref[...].astype(jnp.float32), axis=1)

    @pl.when(s == pl.num_programs(1) - 1)
    def _():
        pooled = acc_ref[...]                       # [TB, 768]; 1/S folded into w1
        h1 = jnp.dot(pooled, w1_ref[...], preferred_element_type=jnp.float32)
        h1 = jnp.maximum(h1 + b1_ref[...], 0.0)     # [TB, 128]
        h2 = jnp.dot(h1, w2_ref[...], preferred_element_type=jnp.float32)
        h2 = jnp.maximum(h2 + b2_ref[...], 0.0)     # [TB, 128]  (cols >= 32 are 0)
        h3 = jnp.dot(h2, w3_ref[...], preferred_element_type=jnp.float32)
        o_ref[...] = (h3 + b3_ref[...]).astype(o_ref.dtype)   # [TB, 128]


@functools.partial(jax.jit, static_argnames=("tb", "ts"))
def text_encoder_forward(x, w1, b1, w2, b2, w3, b3, *, tb=None, ts=None):
    B, S, D = x.shape
    assert D == HIDDEN
    latent = w3.shape[1]

    if tb is None:
        tb = min(_round_up(B, 8), 256)       # >= 8 sublanes, <= MXU height
    if ts is None:
        ts = min(_round_up(S, 8), 256)
    B_pad = _round_up(B, tb)
    S_pad = _round_up(S, ts)

    # Stream activations as bf16 (halves the dominant HBM traffic); zero-pad
    # batch/sequence to the tile grid. Sequence zero-padding is exact because
    # 1/S (the true S) is folded into w1 and the kernel only sums.
    x_p = jnp.pad(x, ((0, B_pad - B), (0, S_pad - S), (0, 0)))
    x_bf16 = x_p.astype(jnp.bfloat16)

    w1s = (w1 * (1.0 / jnp.float32(S))).astype(jnp.float32)
    b1r = jnp.reshape(b1, (1, D1)).astype(jnp.float32)
    w2p = jnp.zeros((D1, NPAD), jnp.float32).at[:, :D2].set(w2)
    b2p = jnp.zeros((1, NPAD), jnp.float32).at[:, :D2].set(jnp.reshape(b2, (1, D2)))
    w3p = jnp.zeros((NPAD, NPAD), jnp.float32).at[:D2, :latent].set(w3)
    b3p = jnp.zeros((1, NPAD), jnp.float32).at[:, :latent].set(jnp.reshape(b3, (1, latent)))

    grid = (B_pad // tb, S_pad // ts)

    def weight_spec(shape):
        return pl.BlockSpec(shape, lambda b, s: (0, 0))

    # VMEM budget: double-buffered x block + resident weights + out + scratch.
    x_block_bytes = tb * ts * D * 2
    weight_bytes = 4 * (D * D1 + D1 + D1 * NPAD + NPAD + NPAD * NPAD + NPAD)
    vmem_bytes = min(
        2 * x_block_bytes + 2 * weight_bytes + 2 * tb * NPAD * 4
        + tb * D * 4 + (4 << 20),
        64 << 20)

    flops = 2 * B_pad * (D * D1 + D1 * NPAD + NPAD * NPAD) + B_pad * S_pad * D
    bytes_accessed = x_bf16.size * 2 + weight_bytes + B_pad * NPAD * 4

    out = pl.pallas_call(
        text_encoder_kernel,
        out_shape=jax.ShapeDtypeStruct((B_pad, NPAD), jnp.float32),
        grid_spec=pltpu.PrefetchScalarGridSpec(
            num_scalar_prefetch=0,
            grid=grid,
            in_specs=[
                pl.BlockSpec((tb, ts, D), lambda b, s: (b, s, 0)),
                weight_spec((D, D1)),       # w1 (1/S folded in)
                weight_spec((1, D1)),       # b1
                weight_spec((D1, NPAD)),    # w2 (cols padded to 128)
                weight_spec((1, NPAD)),     # b2
                weight_spec((NPAD, NPAD)),  # w3 (rows/cols padded to 128)
                weight_spec((1, NPAD)),     # b3
            ],
            out_specs=pl.BlockSpec((tb, NPAD), lambda b, s: (b, 0)),
            scratch_shapes=[pltpu.VMEM((tb, D), jnp.float32)],
        ),
        compiler_params=pltpu.CompilerParams(
            dimension_semantics=("parallel", "arbitrary"),
            vmem_limit_bytes=int(vmem_bytes),
        ),
        cost_estimate=pl.CostEstimate(
            flops=int(flops),
            transcendentals=0,
            bytes_accessed=int(bytes_accessed)),
    )(x_bf16, w1s, b1r, w2p, b2p, w3p, b3p)

    return out[:B, :latent]


def _linear_params(key, fan_in, fan_out):
    # Mirrors torch.nn.Linear default init: U(-1/sqrt(fan_in), 1/sqrt(fan_in)).
    # Stored directly as [fan_in, fan_out] (i.e. W.T of the torch layout).
    kw, kb = jax.random.split(key)
    bound = 1.0 / jnp.sqrt(jnp.float32(fan_in))
    w = jax.random.uniform(kw, (fan_in, fan_out), jnp.float32, -bound, bound)
    b = jax.random.uniform(kb, (1, fan_out), jnp.float32, -bound, bound)
    return w, b


def reference_forward(x, w1, b1, w2, b2, w3, b3):
    pooled = jnp.mean(x, axis=1)
    h = jnp.maximum(pooled @ w1 + b1, 0.0)
    h = jnp.maximum(h @ w2 + b2, 0.0)
    return h @ w3 + b3


if __name__ == "__main__":
    key = jax.random.PRNGKey(0)
    kx, k1, k2, k3 = jax.random.split(key, 4)

    B, S = 2, 8  # small batch, short sequence
    # Synthetic stand-in for HfBert().eval(sentences)'s last_hidden_state.
    x = jax.random.normal(kx, (B, S, HIDDEN), jnp.float32)

    w1, b1 = _linear_params(k1, HIDDEN, D1)
    w2, b2 = _linear_params(k2, D1, D2)
    w3, b3 = _linear_params(k3, D2, LATENT)

    out = text_encoder_forward(x, w1, b1, w2, b2, w3, b3)
    out = jax.block_until_ready(out)

    ref = reference_forward(x, w1, b1, w2, b2, w3, b3)
    assert out.shape == (B, LATENT)
    # x is streamed as bf16 -> compare at bf16-appropriate tolerance.
    assert jnp.allclose(out, ref, atol=2e-2, rtol=2e-2), "mismatch vs reference"

    print("KERNEL_OK")
</pallas_src>

<mosaic_0001>
module attributes {stable_mosaic.version = 11 : i64} {
  func.func @text_encoder_kernel(%arg0: i32, %arg1: i32, %arg2: memref<8x8x768xbf16, #tpu.memory_space<vmem>>, %arg3: memref<768x128xf32, #tpu.memory_space<vmem>>, %arg4: memref<1x128xf32, #tpu.memory_space<vmem>>, %arg5: memref<128x128xf32, #tpu.memory_space<vmem>>, %arg6: memref<1x128xf32, #tpu.memory_space<vmem>>, %arg7: memref<128x128xf32, #tpu.memory_space<vmem>>, %arg8: memref<1x128xf32, #tpu.memory_space<vmem>>, %arg9: memref<8x128xf32, #tpu.memory_space<vmem>>, %arg10: memref<8x768xf32, #tpu.memory_space<vmem>>) attributes {dimension_semantics = [#tpu.dimension_semantics<parallel>, #tpu.dimension_semantics<arbitrary>], iteration_bounds = array<i64: 1, 1>, scalar_prefetch = 0 : i64, scratch_operands = 1 : i64, tpu.core_type = #tpu.core_type<tc>, window_params = [{transform_indices = @transform_0, window_bounds = array<i64: 8, 8, 768>}, {pipeline_mode = #tpu.pipeline_mode<synchronous>, transform_indices = @transform_1, window_bounds = array<i64: 768, 128>}, {pipeline_mode = #tpu.pipeline_mode<synchronous>, transform_indices = @transform_2, window_bounds = array<i64: 1, 128>}, {pipeline_mode = #tpu.pipeline_mode<synchronous>, transform_indices = @transform_3, window_bounds = array<i64: 128, 128>}, {pipeline_mode = #tpu.pipeline_mode<synchronous>, transform_indices = @transform_4, window_bounds = array<i64: 1, 128>}, {pipeline_mode = #tpu.pipeline_mode<synchronous>, transform_indices = @transform_5, window_bounds = array<i64: 128, 128>}, {pipeline_mode = #tpu.pipeline_mode<synchronous>, transform_indices = @transform_6, window_bounds = array<i64: 1, 128>}, {transform_indices = @transform_7, window_bounds = array<i64: 8, 128>}]} {
    %c0_i32 = arith.constant 0 : i32
    %0 = arith.cmpi eq, %arg1, %c0_i32 : i32
    %1 = arith.extui %0 : i1 to i32
    %c0_i32_0 = arith.constant 0 : i32
    %2 = arith.cmpi ne, %1, %c0_i32_0 : i32
    scf.if %2 {
      %cst_9 = arith.constant 0.000000e+00 : f32
      %12 = vector.broadcast %cst_9 : f32 to vector<8x768xf32>
      %c0_10 = arith.constant 0 : index
      %c0_11 = arith.constant 0 : index
      %13 = vector.load %arg10[%c0_10, %c0_11] : memref<8x768xf32, #tpu.memory_space<vmem>>, vector<8x768xf32>
      tpu.vector_store %arg10[%c0_10, %c0_11], %12 {strides = array<i32>} : memref<8x768xf32, #tpu.memory_space<vmem>>, vector<8x768xf32>,
    } else {
    }
    %c0 = arith.constant 0 : index
    %c0_1 = arith.constant 0 : index
    %3 = vector.load %arg10[%c0, %c0_1] : memref<8x768xf32, #tpu.memory_space<vmem>>, vector<8x768xf32>
    %c0_2 = arith.constant 0 : index
    %c0_3 = arith.constant 0 : index
    %c0_4 = arith.constant 0 : index
    %4 = vector.load %arg2[%c0_2, %c0_3, %c0_4] : memref<8x8x768xbf16, #tpu.memory_space<vmem>>, vector<8x8x768xbf16>
    %5 = arith.extf %4 : vector<8x8x768xbf16> to vector<8x8x768xf32>
    %cst = arith.constant dense<0.000000e+00> : vector<8x768xf32>
    %6 = vector.multi_reduction <add>, %5, %cst [1] : vector<8x8x768xf32> to vector<8x768xf32>
    %7 = arith.addf %3, %6 : vector<8x768xf32>
    %c0_5 = arith.constant 0 : index
    %c0_6 = arith.constant 0 : index
    %8 = vector.load %arg10[%c0_5, %c0_6] : memref<8x768xf32, #tpu.memory_space<vmem>>, vector<8x768xf32>
    tpu.vector_store %arg10[%c0_5, %c0_6], %7 {strides = array<i32>} : memref<8x768xf32, #tpu.memory_space<vmem>>, vector<8x768xf32>,
    %c0_i32_7 = arith.constant 0 : i32
    %9 = arith.cmpi eq, %arg1, %c0_i32_7 : i32
    %10 = arith.extui %9 : i1 to i32
    %c0_i32_8 = arith.constant 0 : i32
    %11 = arith.cmpi ne, %10, %c0_i32_8 : i32
    scf.if %11 {
      %c0_9 = arith.constant 0 : index
      %c0_10 = arith.constant 0 : index
      %12 = vector.load %arg10[%c0_9, %c0_10] : memref<8x768xf32, #tpu.memory_space<vmem>>, vector<8x768xf32>
      %c0_11 = arith.constant 0 : index
      %c0_12 = arith.constant 0 : index
      %13 = vector.load %arg3[%c0_11, %c0_12] : memref<768x128xf32, #tpu.memory_space<vmem>>, vector<768x128xf32>
      %cst_13 = arith.constant dense<0.000000e+00> : vector<8x128xf32>
      %14 = tpu.matmul %12, %13, %cst_13 {dimension_numbers = #tpu.dot_dimension_numbers<[1], [0], [0], [1], [0, 0, 1, 1], [], []>} : vector<8x768xf32>, vector<768x128xf32>, vector<8x128xf32> -> vector<8x128xf32>
      %c0_14 = arith.constant 0 : index
      %c0_15 = arith.constant 0 : index
      %15 = vector.load %arg4[%c0_14, %c0_15] : memref<1x128xf32, #tpu.memory_space<vmem>>, vector<1x128xf32>
      %16 = vector.broadcast %15 : vector<1x128xf32> to vector<8x128xf32>
      %17 = arith.addf %14, %16 : vector<8x128xf32>
      %cst_16 = arith.constant 0.000000e+00 : f32
      %18 = vector.broadcast %cst_16 : f32 to vector<8x128xf32>
      %19 = arith.maximumf %17, %18 : vector<8x128xf32>
      %c0_17 = arith.constant 0 : index
      %c0_18 = arith.constant 0 : index
      %20 = vector.load %arg5[%c0_17, %c0_18] : memref<128x128xf32, #tpu.memory_space<vmem>>, vector<128x128xf32>
      %cst_19 = arith.constant dense<0.000000e+00> : vector<8x128xf32>
      %21 = tpu.matmul %19, %20, %cst_19 {dimension_numbers = #tpu.dot_dimension_numbers<[1], [0], [0], [1], [0, 0, 1, 1], [], []>} : vector<8x128xf32>, vector<128x128xf32>, vector<8x128xf32> -> vector<8x128xf32>
      %c0_20 = arith.constant 0 : index
      %c0_21 = arith.constant 0 : index
      %22 = vector.load %arg6[%c0_20, %c0_21] : memref<1x128xf32, #tpu.memory_space<vmem>>, vector<1x128xf32>
      %23 = vector.broadcast %22 : vector<1x128xf32> to vector<8x128xf32>
      %24 = arith.addf %21, %23 : vector<8x128xf32>
      %cst_22 = arith.constant 0.000000e+00 : f32
      %25 = vector.broadcast %cst_22 : f32 to vector<8x128xf32>
      %26 = arith.maximumf %24, %25 : vector<8x128xf32>
      %c0_23 = arith.constant 0 : index
      %c0_24 = arith.constant 0 : index
      %27 = vector.load %arg7[%c0_23, %c0_24] : memref<128x128xf32, #tpu.memory_space<vmem>>, vector<128x128xf32>
      %cst_25 = arith.constant dense<0.000000e+00> : vector<8x128xf32>
      %28 = tpu.matmul %26, %27, %cst_25 {dimension_numbers = #tpu.dot_dimension_numbers<[1], [0], [0], [1], [0, 0, 1, 1], [], []>} : vector<8x128xf32>, vector<128x128xf32>, vector<8x128xf32> -> vector<8x128xf32>
      %c0_26 = arith.constant 0 : index
      %c0_27 = arith.constant 0 : index
      %29 = vector.load %arg8[%c0_26, %c0_27] : memref<1x128xf32, #tpu.memory_space<vmem>>, vector<1x128xf32>
      %30 = vector.broadcast %29 : vector<1x128xf32> to vector<8x128xf32>
      %31 = arith.addf %28, %30 : vector<8x128xf32>
      %c0_28 = arith.constant 0 : index
      %c0_29 = arith.constant 0 : index
      %32 = vector.load %arg9[%c0_28, %c0_29] : memref<8x128xf32, #tpu.memory_space<vmem>>, vector<8x128xf32>
      tpu.vector_store %arg9[%c0_28, %c0_29], %31 {strides = array<i32>} : memref<8x128xf32, #tpu.memory_space<vmem>>, vector<8x128xf32>,
    } else {
    }
    return
  }
  func.func @transform_0(%arg0: i32, %arg1: i32) -> (i32, i32, i32) {
    %c0_i32 = arith.constant 0 : i32
    %c0_i32_0 = arith.constant 0 : i32
    return %arg0, %arg1, %c0_i32 : i32, i32, i32
  }
  func.func @transform_1(%arg0: i32, %arg1: i32) -> (i32, i32) {
    %c0_i32 = arith.constant 0 : i32
    %c0_i32_0 = arith.constant 0 : i32
    %c0_i32_1 = arith.constant 0 : i32
    return %c0_i32, %c0_i32_0 : i32, i32
  }
  func.func @transform_2(%arg0: i32, %arg1: i32) -> (i32, i32) {
    %c0_i32 = arith.constant 0 : i32
    %c0_i32_0 = arith.constant 0 : i32
    %c0_i32_1 = arith.constant 0 : i32
    return %c0_i32, %c0_i32_0 : i32, i32
  }
  func.func @transform_3(%arg0: i32, %arg1: i32) -> (i32, i32) {
    %c0_i32 = arith.constant 0 : i32
    %c0_i32_0 = arith.constant 0 : i32
    %c0_i32_1 = arith.constant 0 : i32
    return %c0_i32, %c0_i32_0 : i32, i32
  }
  func.func @transform_4(%arg0: i32, %arg1: i32) -> (i32, i32) {
    %c0_i32 = arith.constant 0 : i32
    %c0_i32_0 = arith.constant 0 : i32
    %c0_i32_1 = arith.constant 0 : i32
    return %c0_i32, %c0_i32_0 : i32, i32
  }
  func.func @transform_5(%arg0: i32, %arg1: i32) -> (i32, i32) {
    %c0_i32 = arith.constant 0 : i32
    %c0_i32_0 = arith.constant 0 : i32
    %c0_i32_1 = arith.constant 0 : i32
    return %c0_i32, %c0_i32_0 : i32, i32
  }
  func.func @transform_6(%arg0: i32, %arg1: i32) -> (i32, i32) {
    %c0_i32 = arith.constant 0 : i32
    %c0_i32_0 = arith.constant 0 : i32
    %c0_i32_1 = arith.constant 0 : i32
    return %c0_i32, %c0_i32_0 : i32, i32
  }
  func.func @transform_7(%arg0: i32, %arg1: i32) -> (i32, i32) {
    %c0_i32 = arith.constant 0 : i32
    %c0_i32_0 = arith.constant 0 : i32
    return %arg0, %c0_i32 : i32, i32
  }
}

</mosaic_0001>

<bundles_post_ra>
// kernel: text_encoder_forward.1
= control target key start
LH: loop header
LB: loop body
LE: loop exit
PB: predicated region body
PF: predicated region fallthrough
CT: control target
= control target key end

     0   :  { %vm450_vm0 = vcmask 1041409   ;;  %vm452_vm1 = vcmask 1042434   ;;  %vm454_vm2 = vcmask 1043459   ;;  %vm456_vm3 = vcmask 1044484   ;;  %s2172_s1 = inlined_call_operand.vmem [shape: f32[768,128], index: 1, kind: input, shape index: {}]   ;;  %s2173_s0 = inlined_call_operand.vmem [shape: bf16[8,8,768], index: 0, kind: input, shape index: {}]   ;;  %s2174_s3 = inlined_call_operand.vmem [shape: f32[128,128], index: 3, kind: input, shape index: {}]   ;;  %s2175_s5 = inlined_call_operand.vmem [shape: f32[128,128], index: 5, kind: input, shape index: {}]   ;;  %s2176_s2 = inlined_call_operand.vmem [shape: f32[1,128], index: 2, kind: input, shape index: {}]   ;;  %s2177_s4 = inlined_call_operand.vmem [shape: f32[1,128], index: 4, kind: input, shape index: {}]   ;;  %s2178_s6 = inlined_call_operand.vmem [shape: f32[1,128], index: 6, kind: input, shape index: {}]   ;;  %s2179_s7 = inlined_call_operand.vmem [shape: f32[8,128], index: 7, kind: output, shape index: {}]  }
   0x1   :  { %v542_v0 = vld [vmem:[%s2172_s1 + $0x80] sm:$0xff]  ;;  %v543_v1 = vld [vmem:[%s2172_s1 + $0x88] sm:$0xff]  ;;  %v544_v11 = vld [vmem:[%s2172_s1 + $0x90] sm:$0xff]  ;;  %vm458_vm4 = vcmask 1045509   ;;  %vm460_vm5 = vcmask 1046534   ;;  %vm462_vm6 = vcmask 1047559  }
   0x2   :  { %v526_v2 = vld [vmem:[%s2172_s1] sm:$0xff]  ;;  %v1244_v3 = vpack.c.bf16 %v543_v1, %v542_v0  ;;  %v527_v4 = vld [vmem:[%s2172_s1 + $0x8] sm:$0xff]  ;;  %v545_v13 = vld [vmem:[%s2172_s1 + $0x98] sm:$0xff]  ;;  %vm1392_vm7 = vmmov 0  }
   0x3   :  { %v574_v5 = vld [vmem:[%s2172_s1 + $0x180] sm:$0xff]  ;;  %v575_v6 = vld [vmem:[%s2172_s1 + $0x188] sm:$0xff]  ;;  %v1246_v7 = vpack.c.bf16 %v527_v4, %v526_v2  ;;  %v528_v14 = vld [vmem:[%s2172_s1 + $0x10] sm:$0xff]  ;;  %v1248_v16 = vpack.c.bf16 %v545_v13, %v544_v11 }
   0x4   :  { %v1276_v8 = vpack.c.bf16 %v575_v6, %v574_v5  ;;  %v558_v9 = vld [vmem:[%s2172_s1 + $0x100] sm:$0xff]  ;;  %v559_v10 = vld [vmem:[%s2172_s1 + $0x108] sm:$0xff]  ;;  %1245 = vmatprep.subr.bf16.mxu0 %v1244_v3  ;;  %v529_v15 = vld [vmem:[%s2172_s1 + $0x18] sm:$0xff] }
   0x5   :  { %v1278_v12 = vpack.c.bf16 %v559_v10, %v558_v9  ;;  %1247 = vmatpush3.bf16.msra.mxu0 %v1246_v7  ;;  %v1250_v17 = vpack.c.bf16 %v529_v15, %v528_v14  ;;  %v576_v18 = vld [vmem:[%s2172_s1 + $0x190] sm:$0xff]  ;;  %v577_v19 = vld [vmem:[%s2172_s1 + $0x198] sm:$0xff]  ;;  %v546_v23 = vld [vmem:[%s2172_s1 + $0xa0] sm:$0xff] }
   0x6   :  { %1277 = vmatprep.subr.bf16.mxu1 %v1276_v8  ;;  %v560_v20 = vld [vmem:[%s2172_s1 + $0x110] sm:$0xff]  ;;  %v1280_v21 = vpack.c.bf16 %v577_v19, %v576_v18  ;;  %v561_v22 = vld [vmem:[%s2172_s1 + $0x118] sm:$0xff]  ;;  %v547_v24 = vld [vmem:[%s2172_s1 + $0xa8] sm:$0xff]  ;;  %1249 = vmatprep.subr.bf16.mxu0 %v1248_v16 }
   0x7   :  { %1279 = vmatpush3.bf16.msra.mxu1 %v1278_v12  ;;  %v1282_v25 = vpack.c.bf16 %v561_v22, %v560_v20  ;;  %v1252_v26 = vpack.c.bf16 %v547_v24, %v546_v23  ;;  %v530_v27 = vld [vmem:[%s2172_s1 + $0x20] sm:$0xff]  ;;  %v531_v28 = vld [vmem:[%s2172_s1 + $0x28] sm:$0xff]  ;;  %v548_v35 = vld [vmem:[%s2172_s1 + $0xb0] sm:$0xff] }
   0x8   :  { %v578_v29 = vld [vmem:[%s2172_s1 + $0x1a0] sm:$0xff]  ;;  %1281 = vmatprep.subr.bf16.mxu1 %v1280_v21  ;;  %v579_v30 = vld [vmem:[%s2172_s1 + $0x1a8] sm:$0xff]  ;;  %v1254_v33 = vpack.c.bf16 %v531_v28, %v530_v27  ;;  %v549_v36 = vld [vmem:[%s2172_s1 + $0xb8] sm:$0xff] }
   0x9   :  { %v562_v31 = vld [vmem:[%s2172_s1 + $0x120] sm:$0xff]  ;;  %v563_v32 = vld [vmem:[%s2172_s1 + $0x128] sm:$0xff]  ;;  %1251 = vmatpush3.bf16.msra.mxu0 %v1250_v17  ;;  %v1284_v34 = vpack.c.bf16 %v579_v30, %v578_v29  ;;  %v532_v37 = vld [vmem:[%s2172_s1 + $0x30] sm:$0xff]  ;;  %v1256_v39 = vpack.c.bf16 %v549_v36, %v548_v35 }
   0xa   :  { %1253 = vmatprep.subr.bf16.mxu0 %v1252_v26  ;;  %v1286_v38 = vpack.c.bf16 %v563_v32, %v562_v31  ;;  %v533_v40 = vld [vmem:[%s2172_s1 + $0x38] sm:$0xff]  ;;  %v580_v41 = vld [vmem:[%s2172_s1 + $0x1b0] sm:$0xff]  ;;  %v550_v46 = vld [vmem:[%s2172_s1 + $0xc0] sm:$0xff] }
   0xb   :  { %1283 = vmatpush3.bf16.msra.mxu1 %v1282_v25  ;;  %v581_v42 = vld [vmem:[%s2172_s1 + $0x1b8] sm:$0xff]  ;;  %v564_v44 = vld [vmem:[%s2172_s1 + $0x130] sm:$0xff]  ;;  %v551_v47 = vld [vmem:[%s2172_s1 + $0xc8] sm:$0xff]  ;;  %v1258_v50 = vpack.c.bf16 %v533_v40, %v532_v37 }
   0xc   :  { %1285 = vmatprep.subr.bf16.mxu1 %v1284_v34  ;;  %v1288_v43 = vpack.c.bf16 %v581_v42, %v580_v41  ;;  %v565_v45 = vld [vmem:[%s2172_s1 + $0x138] sm:$0xff]  ;;  %v534_v48 = vld [vmem:[%s2172_s1 + $0x40] sm:$0xff]  ;;  %v535_v49 = vld [vmem:[%s2172_s1 + $0x48] sm:$0xff]  ;;  %v1260_v55 = vpack.c.bf16 %v551_v47, %v550_v46 }
   0xd   :  { %1255 = vmatpush3.bf16.msra.mxu0 %v1254_v33  ;;  %v582_v51 = vld [vmem:[%s2172_s1 + $0x1c0] sm:$0xff]  ;;  %v583_v52 = vld [vmem:[%s2172_s1 + $0x1c8] sm:$0xff]  ;;  %v1290_v54 = vpack.c.bf16 %v565_v45, %v564_v44  ;;  %v552_v57 = vld [vmem:[%s2172_s1 + $0xd0] sm:$0xff]  ;;  %v1262_v2 = vpack.c.bf16 %v535_v49, %v534_v48 }
   0xe   :  { %v566_v53 = vld [vmem:[%s2172_s1 + $0x140] sm:$0xff]  ;;  %1257 = vmatprep.subr.bf16.mxu0 %v1256_v39  ;;  %v567_v56 = vld [vmem:[%s2172_s1 + $0x148] sm:$0xff]  ;;  %v553_v58 = vld [vmem:[%s2172_s1 + $0xd8] sm:$0xff]  ;;  %v1292_v59 = vpack.c.bf16 %v583_v52, %v582_v51 }
   0xf   :  { %1287 = vmatpush3.bf16.msra.mxu1 %v1286_v38  ;;  %v536_v60 = vld [vmem:[%s2172_s1 + $0x50] sm:$0xff]  ;;  %v537_v61 = vld [vmem:[%s2172_s1 + $0x58] sm:$0xff]  ;;  %v554_v3 = vld [vmem:[%s2172_s1 + $0xe0] sm:$0xff]  ;;  %v1294_v6 = vpack.c.bf16 %v567_v56, %v566_v53  ;;  %v1264_v7 = vpack.c.bf16 %v553_v58, %v552_v57 }
  0x10   :  { %1289 = vmatprep.subr.bf16.mxu1 %v1288_v43  ;;  %v584_v62 = vld [vmem:[%s2172_s1 + $0x1d0] sm:$0xff]  ;;  %v585_v63 = vld [vmem:[%s2172_s1 + $0x1d8] sm:$0xff]  ;;  %v555_v4 = vld [vmem:[%s2172_s1 + $0xe8] sm:$0xff]  ;;  %v1266_v15 = vpack.c.bf16 %v537_v61, %v536_v60 }
  0x11   :  { %v568_v0 = vld [vmem:[%s2172_s1 + $0x150] sm:$0xff]  ;;  %v569_v1 = vld [vmem:[%s2172_s1 + $0x158] sm:$0xff]  ;;  %1259 = vmatpush3.bf16.msra.mxu0 %v1258_v50  ;;  %v1587_v5 = vld [vmem:[%s2172_s1 + $0x60] sm:$0xff]  ;;  %v1296_v11 = vpack.c.bf16 %v585_v63, %v584_v62  ;;  %v1268_v17 = vpack.c.bf16 %v555_v4, %v554_v3 }
  0x12   :  { %1261 = vmatprep.subr.bf16.mxu0 %v1260_v55  ;;  %v1592_v8 = vld [vmem:[%s2172_s1 + $0x68] sm:$0xff]  ;;  %v586_v9 = vld [vmem:[%s2172_s1 + $0x1e0] sm:$0xff]  ;;  %v1613_v14 = vld [vmem:[%s2172_s1 + $0xf0] sm:$0xff]  ;;  %v1298_v16 = vpack.c.bf16 %v569_v1, %v568_v0 }
  0x13   :  { %1291 = vmatpush3.bf16.msra.mxu1 %v1290_v54  ;;  %v587_v10 = vld [vmem:[%s2172_s1 + $0x1e8] sm:$0xff]  ;;  %v1603_v12 = vld [vmem:[%s2172_s1 + $0x160] sm:$0xff]  ;;  %v1618_v18 = vld [vmem:[%s2172_s1 + $0xf8] sm:$0xff]  ;;  %v1270_v21 = vpack.c.bf16 %v1592_v8, %v1587_v5 }
  0x14   :  { %1293 = vmatprep.subr.bf16.mxu1 %v1292_v59  ;;  %v1608_v13 = vld [vmem:[%s2172_s1 + $0x168] sm:$0xff]  ;;  %v1623_v19 = vld [vmem:[%s2172_s1 + $0x70] sm:$0xff]  ;;  %v1628_v20 = vld [vmem:[%s2172_s1 + $0x78] sm:$0xff]  ;;  %v1300_v22 = vpack.c.bf16 %v587_v10, %v586_v9  ;;  %v1272_v24 = vpack.c.bf16 %v1618_v18, %v1613_v14 }
  0x15   :  { %1263 = vmatpush3.bf16.msra.mxu0 %v1262_v2  ;;  %v1302_v23 = vpack.c.bf16 %v1608_v13, %v1603_v12  ;;  %v588_v25 = vld [vmem:[%s2172_s1 + $0x1f0] sm:$0xff]  ;;  %v589_v26 = vld [vmem:[%s2172_s1 + $0x1f8] sm:$0xff]  ;;  %v1645_v27 = vld [vmem:[%s2173_s0] sm:$0xff]  ;;  %v1274_v28 = vpack.c.bf16 %v1628_v20, %v1623_v19 }
  0x16   :  { %1265 = vmatprep.subr.bf16.mxu0 %v1264_v7  ;;  %v1304_v29 = vpack.c.bf16 %v589_v26, %v588_v25  ;;  %v1652_v30 = vld [vmem:[%s2173_s0 + $0x18] sm:$0xff]  ;;  %v1657_v31 = vld [vmem:[%s2173_s0 + $0x30] sm:$0xff]  ;;  %v1662_v32 = vld [vmem:[%s2173_s0 + $0x48] sm:$0xff]  ;;  %v67_v33 = vunpack.c.h.bf16 %v1645_v27  ;;  %v66_v34 = vunpack.c.l.bf16 %v1645_v27 }
  0x17   :  { %1295 = vmatpush3.bf16.msra.mxu1 %v1294_v6  ;;  %v1669_v35 = vld [vmem:[%s2173_s0 + $0x60] sm:$0xff]  ;;  %v1674_v36 = vld [vmem:[%s2173_s0 + $0x78] sm:$0xff]  ;;  %v1679_v37 = vld [vmem:[%s2173_s0 + $0x90] sm:$0xff]  ;;  %v73_v38 = vunpack.c.h.bf16 %v1652_v30  ;;  %v79_v39 = vunpack.c.h.bf16 %v1657_v31  ;;  %v85_v40 = vunpack.c.h.bf16 %v1662_v32  ;;  %v72_v41 = vunpack.c.l.bf16 %v1652_v30 }
  0x18   :  { %1297 = vmatprep.subr.bf16.mxu1 %v1296_v11  ;;  %v1688_v42 = vld [vmem:[%s2173_s0 + $0xa8] sm:$0xff]  ;;  %v91_v43 = vunpack.c.h.bf16 %v1669_v35  ;;  %v97_v44 = vunpack.c.h.bf16 %v1674_v36  ;;  %v103_v45 = vunpack.c.h.bf16 %v1679_v37  ;;  %v120_v46 = vrot.slane %v67_v33, 4 }
  0x19   :  { %1267 = vmatpush3.bf16.msra.mxu0 %v1266_v15  ;;  %v109_v47 = vunpack.c.h.bf16 %v1688_v42  ;;  %v156_v48 = vrot.slane %v73_v38, 4  ;;  %v192_v49 = vrot.slane %v79_v39, 4  ;;  %v228_v50 = vrot.slane %v85_v40, 4 }
  0x1a   :  { %1269 = vmatprep.subr.bf16.mxu0 %v1268_v17  ;;  %v121_v51 = vadd.f32 %v120_v46, %v67_v33  ;;  %v264_v52 = vrot.slane %v91_v43, 4  ;;  %v300_v53 = vrot.slane %v97_v44, 4  ;;  %v336_v54 = vrot.slane %v103_v45, 4 }
  0x1b   :  { %1299 = vmatpush3.bf16.msra.mxu1 %v1298_v16  ;;  %v157_v55 = vadd.f32 %v156_v48, %v73_v38  ;;  %v193_v56 = vadd.f32 %v192_v49, %v79_v39  ;;  %v229_v57 = vadd.f32 %v228_v50, %v85_v40  ;;  %v372_v58 = vrot.slane %v109_v47, 4 }
  0x1c   :  { %1301 = vmatprep.subr.bf16.mxu1 %v1300_v22  ;;  %v122_v59 = vrot.slane %v121_v51, 2  ;;  %v265_v60 = vadd.f32 %v264_v52, %v91_v43  ;;  %v301_v61 = vadd.f32 %v300_v53, %v97_v44  ;;  %v337_v62 = vadd.f32 %v336_v54, %v103_v45  ;;  %v573_v22 = vld [vmem:[%s2172_s1 + $0x178] sm:$0xff] }
  0x1d   :  { %1271 = vmatpush3.bf16.msra.mxu0 %v1270_v21  ;;  %v158_v63 = vrot.slane %v157_v55, 2  ;;  %v194_v0 = vrot.slane %v193_v56, 2  ;;  %v230_v1 = vrot.slane %v229_v57, 2  ;;  %v373_v2 = vadd.f32 %v372_v58, %v109_v47  ;;  %v572_v21 = vld [vmem:[%s2172_s1 + $0x170] sm:$0xff] }
  0x1e   :  { %1273 = vmatprep.subr.bf16.mxu0 %v1272_v24  ;;  %v123_v3 = vadd.f32 %v122_v59, %v121_v51  ;;  %v266_v4 = vrot.slane %v265_v60, 2  ;;  %v302_v5 = vrot.slane %v301_v61, 2  ;;  %v338_v6 = vrot.slane %v337_v62, 2 }
  0x1f   :  { %1303 = vmatpush3.bf16.msra.mxu1 %v1302_v23  ;;  %v159_v7 = vadd.f32 %v158_v63, %v157_v55  ;;  %v195_v8 = vadd.f32 %v194_v0, %v193_v56  ;;  %v231_v9 = vadd.f32 %v230_v1, %v229_v57  ;;  %v374_v10 = vrot.slane %v373_v2, 2 }
  0x20   :  { %1305 = vmatprep.subr.bf16.mxu1 %v1304_v29  ;;  %v124_v11 = vrot.slane %v123_v3, 1  ;;  %v267_v12 = vadd.f32 %v266_v4, %v265_v60  ;;  %v303_v13 = vadd.f32 %v302_v5, %v301_v61  ;;  %v339_v14 = vadd.f32 %v338_v6, %v337_v62 }
  0x21   :  { %1275 = vmatpush3.bf16.msra.mxu0 %v1274_v28  ;;  %v160_v15 = vrot.slane %v159_v7, 1  ;;  %v196_v16 = vrot.slane %v195_v8, 1  ;;  %v232_v17 = vrot.slane %v231_v9, 1  ;;  %v375_v18 = vadd.f32 %v374_v10, %v373_v2 }
  0x22   :  { %v125_v23 = vadd.f32 %v124_v11, %v123_v3  ;;  %v268_v24 = vrot.slane %v267_v12, 1  ;;  %v304_v25 = vrot.slane %v303_v13, 1  ;;  %v340_v26 = vrot.slane %v339_v14, 1 }
  0x23   :  { %v161_v29 = vadd.f32 %v160_v15, %v159_v7  ;;  %v197_v33 = vadd.f32 %v196_v16, %v195_v8  ;;  %v233_v19 = vadd.f32 %v232_v17, %v231_v9  ;;  %v376_v20 = vrot.slane %v375_v18, 1  ;;  %v606_v17 = vld [vmem:[%s2172_s1 + $0x280] sm:$0xff] }
  0x24   :  { %v269_v28 = vadd.f32 %v268_v24, %v267_v12  ;;  %v305_v38 = vadd.f32 %v304_v25, %v303_v13  ;;  %v341_v39 = vadd.f32 %v340_v26, %v339_v14  ;;  %v1306_v40 = vpack.c.bf16 %v573_v22, %v572_v21  ;;  %v1733_v25 = vld [vmem:[%s2173_s0 + $0x8] sm:$0xff]  ;;  %v1738_v26 = vld [vmem:[%s2173_s0 + $0x20] sm:$0xff] }
  0x25   :  { %v377_v43 = vadd.f32 %v376_v20, %v375_v18  ;;  %v464_v44 = vsel %vm450_vm0, %v161_v29, %v125_v23  ;;  %v78_v45 = vunpack.c.l.bf16 %v1657_v31  ;;  %v84_v46 = vunpack.c.l.bf16 %v1662_v32  ;;  %v607_v18 = vld [vmem:[%s2172_s1 + $0x288] sm:$0xff] }
  0x26   :  { %v465_v47 = vsel %vm452_vm1, %v197_v33, %v464_v44  ;;  %1307 = vmatpush3.bf16.msra.mxu1 %v1306_v40  ;;  %v90_v48 = vunpack.c.l.bf16 %v1669_v35  ;;  %v96_v49 = vunpack.c.l.bf16 %v1674_v36  ;;  %v102_v50 = vunpack.c.l.bf16 %v1679_v37 }
  0x27   :  { %v466_v51 = vsel %vm454_vm2, %v233_v19, %v465_v47  ;;  %v108_v52 = vunpack.c.l.bf16 %v1688_v42  ;;  %v114_v53 = vrot.slane %v66_v34, 4  ;;  %v150_v31 = vrot.slane %v72_v41, 4 }
  0x28   :  { %v467_v32 = vsel %vm456_vm3, %v269_v28, %v466_v51  ;;  %v186_v54 = vrot.slane %v78_v45, 4  ;;  %v222_v55 = vrot.slane %v84_v46, 4  ;;  %v258_v56 = vrot.slane %v90_v48, 4  ;;  %v1743_v28 = vld [vmem:[%s2173_s0 + $0x38] sm:$0xff] }
  0x29   :  { %v468_v35 = vsel %vm458_vm4, %v305_v38, %v467_v32  ;;  %v115_v36 = vadd.f32 %v114_v53, %v66_v34  ;;  %v151_v37 = vadd.f32 %v150_v31, %v72_v41  ;;  %v294_v42 = vrot.slane %v96_v49, 4  ;;  %v1748_v38 = vld [vmem:[%s2173_s0 + $0x50] sm:$0xff] }
  0x2a   :  { %v469_v57 = vsel %vm460_vm5, %v341_v39, %v468_v35  ;;  %v187_v58 = vadd.f32 %v186_v54, %v78_v45  ;;  %v223_v59 = vadd.f32 %v222_v55, %v84_v46  ;;  %v259_v60 = vadd.f32 %v258_v56, %v90_v48  ;;  %v1754_v45 = vld [vmem:[%s2173_s0 + $0x68] sm:$0xff]  ;;  %v1759_v46 = vld [vmem:[%s2173_s0 + $0x80] sm:$0xff] }
  0x2b   :  { %v470_v61 = vsel %vm462_vm6, %v377_v43, %v469_v57  ;;  %v116_v62 = vrot.slane %v115_v36, 2  ;;  %v152_v63 = vrot.slane %v151_v37, 2  ;;  %v295_v0 = vadd.f32 %v294_v42, %v96_v49  ;;  %v1765_v49 = vld [vmem:[%s2173_s0 + $0x98] sm:$0xff] }
  0x2c   :  { %693 = vmatprep.mubr.f32.mxu0 %v470_v61  ;;  %v188_v1 = vrot.slane %v187_v58, 2  ;;  %v224_v2 = vrot.slane %v223_v59, 2  ;;  %v260_v3 = vrot.slane %v259_v60, 2  ;;  %v330_v27 = vrot.slane %v102_v50, 4 }
  0x2d   :  { %v117_v34 = vadd.f32 %v116_v62, %v115_v36  ;;  %v153_v4 = vadd.f32 %v152_v63, %v151_v37  ;;  %v296_v30 = vrot.slane %v295_v0, 2  ;;  %v366_v41 = vrot.slane %v108_v52, 4 }
  0x2e   :  { %v189_v5 = vadd.f32 %v188_v1, %v187_v58  ;;  %v225_v6 = vadd.f32 %v224_v2, %v223_v59  ;;  %v261_v7 = vadd.f32 %v260_v3, %v259_v60  ;;  %v331_v8 = vadd.f32 %v330_v27, %v102_v50  ;;  %v1770_v50 = vld [vmem:[%s2173_s0 + $0xb0] sm:$0xff] }
  0x2f   :  { %v118_v9 = vrot.slane %v117_v34, 1  ;;  %v154_v10 = vrot.slane %v153_v4, 1  ;;  %v297_v11 = vadd.f32 %v296_v30, %v295_v0  ;;  %v367_v12 = vadd.f32 %v366_v41, %v108_v52 }
  0x30   :  { %v190_v13 = vrot.slane %v189_v5, 1  ;;  %v226_v14 = vrot.slane %v225_v6, 1  ;;  %v262_v15 = vrot.slane %v261_v7, 1  ;;  %v332_v16 = vrot.slane %v331_v8, 2 }
  0x31   :  { %v119_v21 = vadd.f32 %v118_v9, %v117_v34  ;;  %v155_v22 = vadd.f32 %v154_v10, %v153_v4  ;;  %v298_v23 = vrot.slane %v297_v11, 1  ;;  %v368_v24 = vrot.slane %v367_v12, 2 }
  0x32   :  { %v191_v29 = vadd.f32 %v190_v13, %v189_v5  ;;  %v227_v33 = vadd.f32 %v226_v14, %v225_v6  ;;  %v263_v19 = vadd.f32 %v262_v15, %v261_v7  ;;  %v333_v20 = vadd.f32 %v332_v16, %v331_v8 }
  0x33   :  { %v299_v39 = vadd.f32 %v298_v23, %v297_v11  ;;  %v369_v40 = vadd.f32 %v368_v24, %v367_v12  ;;  %v451_v43 = vsel %vm450_vm0, %v155_v22, %v119_v21  ;;  %v1308_v44 = vpack.c.bf16 %v607_v18, %v606_v17 }
  0x34   :  { %v334_v47 = vrot.slane %v333_v20, 1  ;;  %v453_v48 = vsel %vm452_vm1, %v191_v29, %v451_v43  ;;  %v69_v51 = vunpack.c.h.bf16 %v1733_v25  ;;  %v75_v52 = vunpack.c.h.bf16 %v1738_v26 }
  0x35   :  { %v370_v53 = vrot.slane %v369_v40, 1  ;;  %v455_v31 = vsel %vm454_vm2, %v227_v33, %v453_v48  ;;  %1309 = vmatprep.subr.bf16.mxu0 %v1308_v44  ;;  %v81_v32 = vunpack.c.h.bf16 %v1743_v28  ;;  %v87_v54 = vunpack.c.h.bf16 %v1748_v38  ;;  %v591_v48 = vld [vmem:[%s2172_s1 + $0x208] sm:$0xff] }
  0x36   :  { %v335_v55 = vadd.f32 %v334_v47, %v333_v20  ;;  %v457_v56 = vsel %vm456_vm3, %v263_v19, %v455_v31  ;;  %v93_v35 = vunpack.c.h.bf16 %v1754_v45  ;;  %v99_v36 = vunpack.c.h.bf16 %v1759_v46  ;;  %v590_v47 = vld [vmem:[%s2172_s1 + $0x200] sm:$0xff] }
  0x37   :  { %v371_v37 = vadd.f32 %v370_v53, %v369_v40  ;;  %v459_v42 = vsel %vm458_vm4, %v299_v39, %v457_v56  ;;  %v105_v57 = vunpack.c.h.bf16 %v1765_v49  ;;  %v111_v58 = vunpack.c.h.bf16 %v1770_v50 }
  0x38   :  { %v461_v59 = vsel %vm460_vm5, %v335_v55, %v459_v42  ;;  %v132_v60 = vrot.slane %v69_v51, 4  ;;  %v168_v61 = vrot.slane %v75_v52, 4  ;;  %v204_v62 = vrot.slane %v81_v32, 4 }
  0x39   :  { %v463_v63 = vsel %vm462_vm6, %v371_v37, %v461_v59  ;;  %v240_v0 = vrot.slane %v87_v54, 4  ;;  %v276_v1 = vrot.slane %v93_v35, 4  ;;  %v312_v2 = vrot.slane %v99_v36, 4 }
  0x3a   :  { %694 = vmatmul.mubr.f32.vlgmr.msra.gmra.mrb[0].mxu0 %v463_v63  ;;  %v133_v3 = vadd.f32 %v132_v60, %v69_v51  ;;  %v169_v27 = vadd.f32 %v168_v61, %v75_v52  ;;  %v205_v34 = vadd.f32 %v204_v62, %v81_v32  ;;  %v348_v4 = vrot.slane %v105_v57, 4 }
  0x3b   :  { %v241_v30 = vadd.f32 %v240_v0, %v87_v54  ;;  %v277_v41 = vadd.f32 %v276_v1, %v93_v35  ;;  %v313_v5 = vadd.f32 %v312_v2, %v99_v36  ;;  %v384_v6 = vrot.slane %v111_v58, 4 }
  0x3c   :  { %v134_v7 = vrot.slane %v133_v3, 2  ;;  %v170_v8 = vrot.slane %v169_v27, 2  ;;  %v206_v9 = vrot.slane %v205_v34, 2  ;;  %v349_v10 = vadd.f32 %v348_v4, %v105_v57 }
  0x3d   :  { %v242_v11 = vrot.slane %v241_v30, 2  ;;  %v278_v12 = vrot.slane %v277_v41, 2  ;;  %v314_v13 = vrot.slane %v313_v5, 2  ;;  %v385_v14 = vadd.f32 %v384_v6, %v111_v58 }
  0x3e   :  { %v135_v15 = vadd.f32 %v134_v7, %v133_v3  ;;  %v171_v16 = vadd.f32 %v170_v8, %v169_v27  ;;  %v207_v17 = vadd.f32 %v206_v9, %v205_v34  ;;  %v350_v18 = vrot.slane %v349_v10, 2 }
  0x3f   :  { %v243_v21 = vadd.f32 %v242_v11, %v241_v30  ;;  %v279_v22 = vadd.f32 %v278_v12, %v277_v41  ;;  %v315_v23 = vadd.f32 %v314_v13, %v313_v5  ;;  %v386_v24 = vrot.slane %v385_v14, 2 }
  0x40   :  { %v136_v29 = vrot.slane %v135_v15, 1  ;;  %v172_v33 = vrot.slane %v171_v16, 1  ;;  %v208_v19 = vrot.slane %v207_v17, 1  ;;  %v351_v20 = vadd.f32 %v350_v18, %v349_v10 }
  0x41   :  { %v244_v39 = vrot.slane %v243_v21, 1  ;;  %v280_v40 = vrot.slane %v279_v22, 1  ;;  %v316_v43 = vrot.slane %v315_v23, 1  ;;  %v387_v44 = vadd.f32 %v386_v24, %v385_v14  ;;  %v609_v24 = vld [vmem:[%s2172_s1 + $0x298] sm:$0xff] }
  0x42   :  { %v137_v51 = vadd.f32 %v136_v29, %v135_v15  ;;  %v173_v52 = vadd.f32 %v172_v33, %v171_v16  ;;  %v209_v53 = vadd.f32 %v208_v19, %v207_v17  ;;  %v352_v31 = vrot.slane %v351_v20, 1 }
  0x43   :  { %v245_v32 = vadd.f32 %v244_v39, %v243_v21  ;;  %v281_v54 = vadd.f32 %v280_v40, %v279_v22  ;;  %v317_v55 = vadd.f32 %v316_v43, %v315_v23  ;;  %v388_v56 = vrot.slane %v387_v44, 1  ;;  %v608_v23 = vld [vmem:[%s2172_s1 + $0x290] sm:$0xff]  ;;  %v593_v40 = vld [vmem:[%s2172_s1 + $0x218] sm:$0xff]  ;;  %v610_v43 = vld [vmem:[%s2172_s1 + $0x2a0] sm:$0xff] }
  0x44   :  { %v353_v35 = vadd.f32 %v352_v31, %v351_v20  ;;  %v478_v36 = vsel %vm450_vm0, %v173_v52, %v137_v51  ;;  %v1310_v37 = vpack.c.bf16 %v591_v48, %v590_v47  ;;  %v68_v42 = vunpack.c.l.bf16 %v1733_v25  ;;  %v592_v39 = vld [vmem:[%s2172_s1 + $0x210] sm:$0xff]  ;;  %v1832_v31 = vld [vmem:[%s2172_s1 + $0x228] sm:$0xff] }
  0x45   :  { %v389_v57 = vadd.f32 %v388_v56, %v387_v44  ;;  %v479_v58 = vsel %vm452_vm1, %v209_v53, %v478_v36  ;;  %v74_v59 = vunpack.c.l.bf16 %v1738_v26  ;;  %v80_v60 = vunpack.c.l.bf16 %v1743_v28  ;;  %v611_v44 = vld [vmem:[%s2172_s1 + $0x2a8] sm:$0xff]  ;;  %v1827_v53 = vld [vmem:[%s2172_s1 + $0x220] sm:$0xff] }
  0x46   :  { %v480_v61 = vsel %vm454_vm2, %v245_v32, %v479_v58  ;;  %1311 = vmatpush3.bf16.msra.mxu0 %v1310_v37  ;;  %v86_v62 = vunpack.c.l.bf16 %v1748_v38  ;;  %v92_v63 = vunpack.c.l.bf16 %v1754_v45  ;;  %v98_v0 = vunpack.c.l.bf16 %v1759_v46  ;;  %v1837_v32 = vld [vmem:[%s2172_s1 + $0x2b0] sm:$0xff]  ;;  %v1862_v58 = vld [vmem:[%s2172_s1 + $0x2c8] sm:$0xff] }
  0x47   :  { %v481_v1 = vsel %vm456_vm3, %v281_v54, %v480_v61  ;;  %v104_v25 = vunpack.c.l.bf16 %v1765_v49  ;;  %v110_v2 = vunpack.c.l.bf16 %v1770_v50  ;;  %v126_v3 = vrot.slane %v68_v42, 4  ;;  %v1842_v54 = vld [vmem:[%s2172_s1 + $0x2b8] sm:$0xff]  ;;  %v1847_v37 = vld [vmem:[%s2172_s1 + $0x230] sm:$0xff] }
  0x48   :  { %v482_v26 = vsel %vm458_vm4, %v317_v55, %v481_v1  ;;  %v162_v27 = vrot.slane %v74_v59, 4  ;;  %v198_v28 = vrot.slane %v80_v60, 4  ;;  %v234_v34 = vrot.slane %v86_v62, 4  ;;  %v1877_v1 = vld [vmem:[%s2172_s1 + $0x2d0] sm:$0xff] }
  0x49   :  { %v483_v4 = vsel %vm460_vm5, %v353_v35, %v482_v26  ;;  %v127_v30 = vadd.f32 %v126_v3, %v68_v42  ;;  %v270_v38 = vrot.slane %v92_v63, 4  ;;  %v306_v41 = vrot.slane %v98_v0, 4  ;;  %v1852_v42 = vld [vmem:[%s2172_s1 + $0x238] sm:$0xff] }
  0x4a   :  { %v484_v45 = vsel %vm462_vm6, %v389_v57, %v483_v4  ;;  %v163_v46 = vadd.f32 %v162_v27, %v74_v59  ;;  %v199_v5 = vadd.f32 %v198_v28, %v80_v60  ;;  %v235_v6 = vadd.f32 %v234_v34, %v86_v62  ;;  %v1857_v57 = vld [vmem:[%s2172_s1 + $0x2c0] sm:$0xff]  ;;  %v1887_v28 = vld [vmem:[%s2172_s1 + $0x250] sm:$0xff]  ;;  %v1892_v34 = vld [vmem:[%s2172_s1 + $0x258] sm:$0xff] }
  0x4b   :  { %763 = vmatprep.mubr.f32.mxu1 %v484_v45  ;;  %v128_v49 = vrot.slane %v127_v30, 2  ;;  %v271_v7 = vadd.f32 %v270_v38, %v92_v63  ;;  %v307_v50 = vadd.f32 %v306_v41, %v98_v0  ;;  %v342_v8 = vrot.slane %v104_v25, 4  ;;  %v1867_v63 = vld [vmem:[%s2172_s1 + $0x240] sm:$0xff]  ;;  %v1872_v0 = vld [vmem:[%s2172_s1 + $0x248] sm:$0xff] }
  0x4c   :  { %v164_v9 = vrot.slane %v163_v46, 2  ;;  %v200_v10 = vrot.slane %v199_v5, 2  ;;  %v236_v11 = vrot.slane %v235_v6, 2  ;;  %v378_v12 = vrot.slane %v110_v2, 4  ;;  %v1897_v4 = vld [vmem:[%s2172_s1 + $0x2e0] sm:$0xff] }
  0x4d   :  { %v129_v13 = vadd.f32 %v128_v49, %v127_v30  ;;  %v272_v14 = vrot.slane %v271_v7, 2  ;;  %v308_v15 = vrot.slane %v307_v50, 2  ;;  %v343_v16 = vadd.f32 %v342_v8, %v104_v25  ;;  %v1882_v25 = vld [vmem:[%s2172_s1 + $0x2d8] sm:$0xff] }
  0x4e   :  { %v165_v17 = vadd.f32 %v164_v9, %v163_v46  ;;  %v201_v18 = vadd.f32 %v200_v10, %v199_v5  ;;  %v237_v21 = vadd.f32 %v236_v11, %v235_v6  ;;  %v379_v22 = vadd.f32 %v378_v12, %v110_v2  ;;  %v1903_v46 = vld [vmem:[%s2172_s1 + $0x2e8] sm:$0xff]  ;;  %v1908_v5 = vld [vmem:[%s2172_s1 + $0x260] sm:$0xff]  ;;  %v1923_v9 = vld [vmem:[%s2172_s1 + $0x2f0] sm:$0xff] }
  0x4f   :  { %v130_v29 = vrot.slane %v129_v13, 1  ;;  %v273_v33 = vadd.f32 %v272_v14, %v271_v7  ;;  %v309_v19 = vadd.f32 %v308_v15, %v307_v50  ;;  %v344_v20 = vrot.slane %v343_v16, 2  ;;  %v1913_v6 = vld [vmem:[%s2172_s1 + $0x268] sm:$0xff]  ;;  %v1928_v10 = vld [vmem:[%s2172_s1 + $0x2f8] sm:$0xff]  ;;  %v1933_v11 = vld [vmem:[%s2172_s1 + $0x270] sm:$0xff] }
  0x50   :  { %v166_v47 = vrot.slane %v165_v17, 1  ;;  %v202_v48 = vrot.slane %v201_v18, 1  ;;  %v238_v51 = vrot.slane %v237_v21, 1  ;;  %v380_v52 = vrot.slane %v379_v22, 2 }
  0x51   :  { %v131_v55 = vadd.f32 %v130_v29, %v129_v13  ;;  %v274_v56 = vrot.slane %v273_v33, 1  ;;  %v310_v35 = vrot.slane %v309_v19, 1  ;;  %v345_v36 = vadd.f32 %v344_v20, %v343_v16  ;;  %v1943_v16 = vld [vmem:[%s2172_s1 + $0x278] sm:$0xff]  ;;  %v1965_v29 = vld [vmem:[%s2173_s0 + $0x40] sm:$0xff] }
  0x52   :  { %v167_v59 = vadd.f32 %v166_v47, %v165_v17  ;;  %v203_v60 = vadd.f32 %v202_v48, %v201_v18  ;;  %v239_v61 = vadd.f32 %v238_v51, %v237_v21  ;;  %v381_v62 = vadd.f32 %v380_v52, %v379_v22  ;;  %v1948_v17 = vld [vmem:[%s2173_s0 + $0x10] sm:$0xff]  ;;  %v1953_v18 = vld [vmem:[%s2173_s0 + $0x28] sm:$0xff]  ;;  %v1992_v47 = vld [vmem:[%s2173_s0 + $0xa0] sm:$0xff] }
  0x53   :  { %v275_v2 = vadd.f32 %v274_v56, %v273_v33  ;;  %v311_v3 = vadd.f32 %v310_v35, %v309_v19  ;;  %v346_v26 = vrot.slane %v345_v36, 1  ;;  %v1312_v27 = vpack.c.bf16 %v609_v24, %v608_v23  ;;  %v1970_v33 = vld [vmem:[%s2173_s0 + $0x58] sm:$0xff]  ;;  %v1975_v19 = vld [vmem:[%s2173_s0 + $0x70] sm:$0xff] }
  0x54   :  { %v382_v30 = vrot.slane %v381_v62, 1  ;;  %v471_v38 = vsel %vm450_vm0, %v167_v59, %v131_v55  ;;  %v1314_v41 = vpack.c.bf16 %v593_v40, %v592_v39  ;;  %v1316_v45 = vpack.c.bf16 %v611_v44, %v610_v43  ;;  %v1987_v44 = vld [vmem:[%s2173_s0 + $0x88] sm:$0xff]  ;;  %v1997_v48 = vld [vmem:[%s2173_s0 + $0xb8] sm:$0xff] }
  0x55   :  { %v347_v49 = vadd.f32 %v346_v26, %v345_v36  ;;  %v472_v7 = vsel %vm452_vm1, %v203_v60, %v471_v38  ;;  %1313 = vmatprep.subr.bf16.mxu0 %v1312_v27  ;;  %v1318_v50 = vpack.c.bf16 %v1832_v31, %v1827_v53  ;;  %v1320_v8 = vpack.c.bf16 %v1842_v54, %v1837_v32 }
  0x56   :  { %v383_v12 = vadd.f32 %v382_v30, %v381_v62  ;;  %v473_v13 = vsel %vm454_vm2, %v239_v61, %v472_v7  ;;  %1315 = vmatpush3.bf16.msra.mxu0 %v1314_v41  ;;  %v1322_v14 = vpack.c.bf16 %v1852_v42, %v1847_v37  ;;  %v1324_v15 = vpack.c.bf16 %v1862_v58, %v1857_v57 }
  0x57   :  { %v474_v21 = vsel %vm456_vm3, %v275_v2, %v473_v13  ;;  %1317 = vmatprep.subr.bf16.mxu0 %v1316_v45  ;;  %v1326_v22 = vpack.c.bf16 %v1872_v0, %v1867_v63  ;;  %v1328_v23 = vpack.c.bf16 %v1882_v25, %v1877_v1  ;;  %v1330_v24 = vpack.c.bf16 %v1892_v34, %v1887_v28 }
  0x58   :  { %v475_v20 = vsel %vm458_vm4, %v311_v3, %v474_v21  ;;  %v1332_v39 = vpack.c.bf16 %v1903_v46, %v1897_v4  ;;  %v1334_v40 = vpack.c.bf16 %v1913_v6, %v1908_v5  ;;  %v1336_v43 = vpack.c.bf16 %v1928_v10, %v1923_v9 }
  0x59   :  { %v476_v51 = vsel %vm460_vm5, %v347_v49, %v475_v20  ;;  %v1338_v52 = vpack.c.bf16 %v1943_v16, %v1933_v11  ;;  %v71_v53 = vunpack.c.h.bf16 %v1948_v17  ;;  %v77_v31 = vunpack.c.h.bf16 %v1953_v18 }
  0x5a   :  { %v477_v32 = vsel %vm462_vm6, %v383_v12, %v476_v51  ;;  %1319 = vmatpush3.bf16.msra.mxu0 %v1318_v50  ;;  %v83_v54 = vunpack.c.h.bf16 %v1965_v29  ;;  %v89_v55 = vunpack.c.h.bf16 %v1970_v33  ;;  %v95_v56 = vunpack.c.h.bf16 %v1975_v19 }
  0x5b   :  { %764 = vmatmul.mubr.f32.vlgmr.msra.gmra.mrb[0].mxu1 %v477_v32  ;;  %1321 = vmatprep.subr.bf16.mxu0 %v1320_v8  ;;  %v101_v35 = vunpack.c.h.bf16 %v1987_v44  ;;  %v107_v36 = vunpack.c.h.bf16 %v1992_v47  ;;  %v113_v37 = vunpack.c.h.bf16 %v1997_v48  ;;  %v144_v42 = vrot.slane %v71_v53, 4 }
  0x5c   :  { %v180_v57 = vrot.slane %v77_v31, 4  ;;  %v216_v58 = vrot.slane %v83_v54, 4  ;;  %v252_v59 = vrot.slane %v89_v55, 4  ;;  %v288_v60 = vrot.slane %v95_v56, 4 }
  0x5d   :  { %v145_v61 = vadd.f32 %v144_v42, %v71_v53  ;;  %v324_v62 = vrot.slane %v101_v35, 4  ;;  %v360_v63 = vrot.slane %v107_v36, 4  ;;  %v396_v0 = vrot.slane %v113_v37, 4 }
  0x5e   :  { %1323 = vmatpush3.bf16.msra.mxu0 %v1322_v14  ;;  %v181_v1 = vadd.f32 %v180_v57, %v77_v31  ;;  %v217_v25 = vadd.f32 %v216_v58, %v83_v54  ;;  %v253_v2 = vadd.f32 %v252_v59, %v89_v55  ;;  %v289_v3 = vadd.f32 %v288_v60, %v95_v56 }
  0x5f   :  { %1325 = vmatprep.subr.bf16.mxu0 %v1324_v15  ;;  %v146_v26 = vrot.slane %v145_v61, 2  ;;  %v325_v27 = vadd.f32 %v324_v62, %v101_v35  ;;  %v361_v30 = vadd.f32 %v360_v63, %v107_v36  ;;  %v397_v38 = vadd.f32 %v396_v0, %v113_v37 }
  0x60   :  { %v182_v41 = vrot.slane %v181_v1, 2  ;;  %v218_v45 = vrot.slane %v217_v25, 2  ;;  %v254_v49 = vrot.slane %v253_v2, 2  ;;  %v290_v7 = vrot.slane %v289_v3, 2 }
  0x61   :  { %v147_v50 = vadd.f32 %v146_v26, %v145_v61  ;;  %v326_v8 = vrot.slane %v325_v27, 2  ;;  %v362_v12 = vrot.slane %v361_v30, 2  ;;  %v398_v13 = vrot.slane %v397_v38, 2 }
  0x62   :  { %1327 = vmatpush3.bf16.msra.mxu0 %v1326_v22  ;;  %v183_v21 = vadd.f32 %v182_v41, %v181_v1  ;;  %v219_v14 = vadd.f32 %v218_v45, %v217_v25  ;;  %v255_v20 = vadd.f32 %v254_v49, %v253_v2  ;;  %v291_v51 = vadd.f32 %v290_v7, %v289_v3 }
  0x63   :  { %1329 = vmatprep.subr.bf16.mxu0 %v1328_v23  ;;  %v148_v53 = vrot.slane %v147_v50, 1  ;;  %v327_v15 = vadd.f32 %v326_v8, %v325_v27  ;;  %v363_v31 = vadd.f32 %v362_v12, %v361_v30  ;;  %v399_v32 = vadd.f32 %v398_v13, %v397_v38 }
  0x64   :  { %v184_v54 = vrot.slane %v183_v21, 1  ;;  %v220_v55 = vrot.slane %v219_v14, 1  ;;  %v256_v56 = vrot.slane %v255_v20, 1  ;;  %v292_v35 = vrot.slane %v291_v51, 1 }
  0x65   :  { %v149_v36 = vadd.f32 %v148_v53, %v147_v50  ;;  %v328_v37 = vrot.slane %v327_v15, 1  ;;  %v364_v42 = vrot.slane %v363_v31, 1  ;;  %v400_v57 = vrot.slane %v399_v32, 1 }
  0x66   :  { %1331 = vmatpush3.bf16.msra.mxu0 %v1330_v24  ;;  %v185_v22 = vadd.f32 %v184_v54, %v183_v21  ;;  %v221_v58 = vadd.f32 %v220_v55, %v219_v14  ;;  %v257_v59 = vadd.f32 %v256_v56, %v255_v20  ;;  %v293_v23 = vadd.f32 %v292_v35, %v291_v51 }
  0x67   :  { %1333 = vmatprep.subr.bf16.mxu0 %v1332_v39  ;;  %v329_v60 = vadd.f32 %v328_v37, %v327_v15  ;;  %v365_v61 = vadd.f32 %v364_v42, %v363_v31  ;;  %v401_v62 = vadd.f32 %v400_v57, %v399_v32  ;;  %v70_v63 = vunpack.c.l.bf16 %v1948_v17 }
  0x68   :  { %v492_v0 = vsel %vm450_vm0, %v185_v22, %v149_v36  ;;  %v76_v1 = vunpack.c.l.bf16 %v1953_v18  ;;  %v82_v28 = vunpack.c.l.bf16 %v1965_v29  ;;  %v88_v34 = vunpack.c.l.bf16 %v1970_v33 }
  0x69   :  { %v493_v24 = vsel %vm452_vm1, %v221_v58, %v492_v0  ;;  %v94_v25 = vunpack.c.l.bf16 %v1975_v19  ;;  %v100_v4 = vunpack.c.l.bf16 %v1987_v44  ;;  %v106_v46 = vunpack.c.l.bf16 %v1992_v47 }
  0x6a   :  { %1335 = vmatpush3.bf16.msra.mxu0 %v1334_v40  ;;  %v494_v17 = vsel %vm454_vm2, %v257_v59, %v493_v24  ;;  %v112_v18 = vunpack.c.l.bf16 %v1997_v48  ;;  %v138_v39 = vrot.slane %v70_v63, 4  ;;  %v174_v29 = vrot.slane %v76_v1, 4 }
  0x6b   :  { %1337 = vmatprep.subr.bf16.mxu0 %v1336_v43  ;;  %v495_v33 = vsel %vm456_vm3, %v293_v23, %v494_v17  ;;  %v210_v19 = vrot.slane %v82_v28, 4  ;;  %v246_v44 = vrot.slane %v88_v34, 4  ;;  %v282_v2 = vrot.slane %v94_v25, 4  ;;  %v842_v17 = vld [vmem:[%s2174_s3 + $0x10] sm:$0xff] }
  0x6c   :  { %v496_v47 = vsel %vm458_vm4, %v329_v60, %v495_v33  ;;  %v139_v3 = vadd.f32 %v138_v39, %v70_v63  ;;  %v175_v5 = vadd.f32 %v174_v29, %v76_v1  ;;  %v318_v6 = vrot.slane %v100_v4, 4  ;;  %v843_v39 = vld [vmem:[%s2174_s3 + $0x18] sm:$0xff]  ;;  %v844_v33 = vld [vmem:[%s2174_s3 + $0x20] sm:$0xff] }
  0x6d   :  { %v497_v40 = vsel %vm460_vm5, %v365_v61, %v496_v47  ;;  %v211_v26 = vadd.f32 %v210_v19, %v82_v28  ;;  %v247_v48 = vadd.f32 %v246_v44, %v88_v34  ;;  %v283_v27 = vadd.f32 %v282_v2, %v94_v25  ;;  %v845_v19 = vld [vmem:[%s2174_s3 + $0x28] sm:$0xff]  ;;  %v846_v2 = vld [vmem:[%s2174_s3 + $0x30] sm:$0xff]  ;;  %v847_v47 = vld [vmem:[%s2174_s3 + $0x38] sm:$0xff] }
  0x6e   :  { %1339 = vmatpush3.bf16.msra.mxu0 %v1338_v52  ;;  %v498_v9 = vsel %vm462_vm6, %v401_v62, %v497_v40  ;;  %v140_v10 = vrot.slane %v139_v3, 2  ;;  %v176_v43 = vrot.slane %v175_v5, 2  ;;  %v319_v30 = vadd.f32 %v318_v6, %v100_v4  ;;  %v840_v4 = vld [vmem:[%s2174_s3] sm:$0xff]  ;;  %v849_v6 = vld [vmem:[%s2174_s3 + $0x48] sm:$0xff] }
  0x6f   :  { %833 = vmatprep.mubr.f32.mxu0 %v498_v9  ;;  %v212_v38 = vrot.slane %v211_v26, 2  ;;  %v248_v41 = vrot.slane %v247_v48, 2  ;;  %v284_v45 = vrot.slane %v283_v27, 2  ;;  %v354_v49 = vrot.slane %v106_v46, 4  ;;  %v852_v9 = vld [vmem:[%s2174_s3 + $0x60] sm:$0xff] }
  0x70   :  { %v141_v7 = vadd.f32 %v140_v10, %v139_v3  ;;  %v177_v50 = vadd.f32 %v176_v43, %v175_v5  ;;  %v320_v8 = vrot.slane %v319_v30, 2  ;;  %v390_v12 = vrot.slane %v112_v18, 4  ;;  %v848_v5 = vld [vmem:[%s2174_s3 + $0x40] sm:$0xff]  ;;  %v853_v10 = vld [vmem:[%s2174_s3 + $0x68] sm:$0xff] }
  0x71   :  { %v213_v13 = vadd.f32 %v212_v38, %v211_v26  ;;  %v249_v21 = vadd.f32 %v248_v41, %v247_v48  ;;  %v285_v14 = vadd.f32 %v284_v45, %v283_v27  ;;  %v355_v20 = vadd.f32 %v354_v49, %v106_v46  ;;  %v841_v46 = vld [vmem:[%s2174_s3 + $0x8] sm:$0xff]  ;;  %v850_v26 = vld [vmem:[%s2174_s3 + $0x50] sm:$0xff]  ;;  %v851_v48 = vld [vmem:[%s2174_s3 + $0x58] sm:$0xff] }
  0x72   :  { %v142_v11 = vrot.slane %v141_v7, 1  ;;  %v178_v16 = vrot.slane %v177_v50, 1  ;;  %v321_v52 = vadd.f32 %v320_v8, %v319_v30  ;;  %v391_v51 = vadd.f32 %v390_v12, %v112_v18  ;;  %v854_v30 = vld [vmem:[%s2174_s3 + $0x70] sm:$0xff]  ;;  %v855_v38 = vld [vmem:[%s2174_s3 + $0x78] sm:$0xff]  ;;  %v934_v49 = vld [vmem:[%s2175_s5] sm:$0xff] }
  0x73   :  { %v214_v53 = vrot.slane %v213_v13, 1  ;;  %v250_v15 = vrot.slane %v249_v21, 1  ;;  %v286_v31 = vrot.slane %v285_v14, 1  ;;  %v356_v32 = vrot.slane %v355_v20, 2  ;;  %v937_v12 = vld [vmem:[%s2175_s5 + $0x18] sm:$0xff] }
  0x74   :  { %v143_v54 = vadd.f32 %v142_v11, %v141_v7  ;;  %v179_v55 = vadd.f32 %v178_v16, %v177_v50  ;;  %v322_v56 = vrot.slane %v321_v52, 1  ;;  %v392_v35 = vrot.slane %v391_v51, 2  ;;  %v935_v7 = vld [vmem:[%s2175_s5 + $0x8] sm:$0xff]  ;;  %v936_v50 = vld [vmem:[%s2175_s5 + $0x10] sm:$0xff]  ;;  %v941_v16 = vld [vmem:[%s2175_s5 + $0x38] sm:$0xff] }
  0x75   :  { %v215_v36 = vadd.f32 %v214_v53, %v213_v13  ;;  %v251_v37 = vadd.f32 %v250_v15, %v249_v21  ;;  %v287_v42 = vadd.f32 %v286_v31, %v285_v14  ;;  %v357_v57 = vadd.f32 %v356_v32, %v355_v20  ;;  %v938_v21 = vld [vmem:[%s2175_s5 + $0x20] sm:$0xff]  ;;  %v939_v14 = vld [vmem:[%s2175_s5 + $0x28] sm:$0xff]  ;;  %v940_v11 = vld [vmem:[%s2175_s5 + $0x30] sm:$0xff] }
  0x76   :  { %v323_v22 = vadd.f32 %v322_v56, %v321_v52  ;;  %v393_v58 = vadd.f32 %v392_v35, %v391_v51  ;;  %v485_v59 = vsel %vm450_vm0, %v179_v55, %v143_v54  ;;  %v1391_v25 = vmov 0.0|0.0   ;;  %v942_v51 = vld [vmem:[%s2175_s5 + $0x40] sm:$0xff]  ;;  %v943_v53 = vld [vmem:[%s2175_s5 + $0x48] sm:$0xff]  ;;  %v944_v31 = vld [vmem:[%s2175_s5 + $0x50] sm:$0xff] }
  0x77   :  { %v358_v23 = vrot.slane %v357_v57, 1  ;;  %v486_v60 = vsel %vm452_vm1, %v215_v36, %v485_v59  ;;  %1340 = vmatprep.subr.bf16.mxu1 %v1391_v25  ;;  %1364 = vmatprep.subr.bf16.mxu0 %v1391_v25  ;;  %v1341_v18 = vpack.c.bf16 %v841_v46, %v840_v4  ;;  %v1344_v29 = vpack.c.bf16 %v843_v39, %v842_v17  ;;  %v945_v32 = vld [vmem:[%s2175_s5 + $0x58] sm:$0xff]  ;;  %v946_v55 = vld [vmem:[%s2175_s5 + $0x60] sm:$0xff]  ;;  %v947_v56 = vld [vmem:[%s2175_s5 + $0x68] sm:$0xff] }
  0x78   :  { %v394_v61 = vrot.slane %v393_v58, 1  ;;  %v487_v62 = vsel %vm454_vm2, %v251_v37, %v486_v60  ;;  %v1347_v44 = vpack.c.bf16 %v845_v19, %v844_v33  ;;  %v1350_v3 = vpack.c.bf16 %v847_v47, %v846_v2  ;;  %v1034_v39 = vld [vmem:[%s2178_s6] ss:$0 sm:$0xff] }
  0x79   :  { %v359_v63 = vadd.f32 %v358_v23, %v357_v57  ;;  %v488_v0 = vsel %vm456_vm3, %v287_v42, %v487_v62  ;;  %1342 = vmatpush3.bf16.msra.mxu1 %v1341_v18  ;;  %v1353_v40 = vpack.c.bf16 %v849_v6, %v848_v5  ;;  %v1356_v27 = vpack.c.bf16 %v851_v48, %v850_v26  ;;  %v1032_v57 = vld [vmem:[%s2176_s2] ss:$0 sm:$0xff] }
  0x7a   :  { %v395_v1 = vadd.f32 %v394_v61, %v393_v58  ;;  %v489_v28 = vsel %vm458_vm4, %v323_v22, %v488_v0  ;;  %1343 = vmatprep.subr.bf16.mxu1 %v1391_v25  ;;  %v1359_v43 = vpack.c.bf16 %v853_v10, %v852_v9  ;;  %v1362_v41 = vpack.c.bf16 %v855_v38, %v854_v30 }
  0x7b   :  { %v490_v34 = vsel %vm460_vm5, %v359_v63, %v489_v28  ;;  %v1393_v45 = vmov 0.0   ;;  %v1365_v8 = vpack.c.bf16 %v935_v7, %v934_v49  ;;  %v1368_v13 = vpack.c.bf16 %v937_v12, %v936_v50  ;;  %v948_v28 = vld [vmem:[%s2175_s5 + $0x70] sm:$0xff] }
  0x7c   :  { %v491_v24 = vsel %vm462_vm6, %v395_v1, %v490_v34  ;;  %1206 = vmatprep.mubr.msk.f32.mxu1 %vm1392_vm7, %v1393_v45  ;;  %v1371_v20 = vpack.c.bf16 %v939_v14, %v938_v21  ;;  %v1374_v52 = vpack.c.bf16 %v941_v16, %v940_v11  ;;  %v1377_v15 = vpack.c.bf16 %v943_v53, %v942_v51  ;;  %v949_v34 = vld [vmem:[%s2175_s5 + $0x78] sm:$0xff] }
  0x7d   :  { %834 = vmatmul.mubr.f32.vlgmr.msra.gmra.mrb[2].mxu0 %v491_v24  ;;  %1345 = vmatpush3.bf16.msra.mxu1 %v1344_v29  ;;  %v1380_v54 = vpack.c.bf16 %v945_v32, %v944_v31  ;;  %v1383_v35 = vpack.c.bf16 %v947_v56, %v946_v55  ;;  %v1386_v24 = vpack.c.bf16 %v949_v34, %v948_v28 }
  0x7e   :  { %1346 = vmatprep.subr.bf16.mxu1 %v1391_v25  ;;  %1241 = vmatprep.mubr.msk.f32.mxu0 %vm1392_vm7, %v1393_v45 }
  0x7f   :  { %1366 = vmatpush3.bf16.msra.mxu0 %v1365_v8 }
  0x80   :  { %1367 = vmatprep.subr.bf16.mxu0 %v1391_v25 }
  0x81   :  { %1348 = vmatpush3.bf16.msra.mxu1 %v1347_v44 }
  0x82   :  { %1349 = vmatprep.subr.bf16.mxu1 %v1391_v25 }
  0x83   :  { %1369 = vmatpush3.bf16.msra.mxu0 %v1368_v13 }
  0x84   :  { %1370 = vmatprep.subr.bf16.mxu0 %v1391_v25 }
  0x85   :  { %1351 = vmatpush3.bf16.msra.mxu1 %v1350_v3 }
  0x86   :  { %1352 = vmatprep.subr.bf16.mxu1 %v1391_v25 }
  0x87   :  { %1372 = vmatpush3.bf16.msra.mxu0 %v1371_v20 }
  0x88   :  { %1373 = vmatprep.subr.bf16.mxu0 %v1391_v25 }
  0x89   :  { %1354 = vmatpush3.bf16.msra.mxu1 %v1353_v40 }
  0x8a   :  { %1355 = vmatprep.subr.bf16.mxu1 %v1391_v25 }
  0x8b   :  { %1375 = vmatpush3.bf16.msra.mxu0 %v1374_v52 }
  0x8c   :  { %1376 = vmatprep.subr.bf16.mxu0 %v1391_v25 }
  0x8d   :  { %1357 = vmatpush3.bf16.msra.mxu1 %v1356_v27 }
  0x8e   :  { %1358 = vmatprep.subr.bf16.mxu1 %v1391_v25 }
  0x8f   :  { %1378 = vmatpush3.bf16.msra.mxu0 %v1377_v15 }
  0x90   :  { %1379 = vmatprep.subr.bf16.mxu0 %v1391_v25 }
  0x91   :  { %1360 = vmatpush3.bf16.msra.mxu1 %v1359_v43 }
  0x92   :  { %1361 = vmatprep.subr.bf16.mxu1 %v1391_v25 }
  0x93   :  { %1381 = vmatpush3.bf16.msra.mxu0 %v1380_v54 }
  0x94   :  { %1382 = vmatprep.subr.bf16.mxu0 %v1391_v25 }
  0x95   :  { %1363 = vmatpush3.bf16.msra.mxu1 %v1362_v41 }
  0x97   :  { %1384 = vmatpush3.bf16.msra.mxu0 %v1383_v35 }
  0x98   :  { %1385 = vmatprep.subr.bf16.mxu0 %v1391_v25  ;;  %v1033_v25 = vld [vmem:[%s2177_s4] ss:$0 sm:$0xff] }
  0x9b   :  { %1387 = vmatpush3.bf16.msra.mxu0 %v1386_v24 }
 0x10d   :  { %v1067_v36 = vpop.f32.mrb[0].mxu0 }
 0x10e   :  { %v1068_v37 = vpop.f32.mrb[1].mxu0 }
 0x10f   :  { %v1069_v42 = vadd.f32 %v1068_v37, %v1067_v36 }
 0x111   :  { %v696_v22 = vadd.f32 %v1069_v42, %v1032_v57 }
 0x12e   :  { %v1102_v58 = vpop.f32.mrb[0].mxu1 }
 0x12f   :  { %v1103_v59 = vpop.f32.mrb[1].mxu1 }
 0x130   :  { %v1104_v23 = vadd.f32 %v1103_v59, %v1102_v58 }
 0x132   :  { %v766_v60 = vadd.f32 %v1104_v23, %v696_v22 }
 0x150   :  { %v1137_v61 = vpop.f32.mrb[2].mxu0 }
 0x151   :  { %v1138_v62 = vpop.f32.mrb[3].mxu0 }
 0x152   :  { %v1139_v63 = vadd.f32 %v1138_v62, %v1137_v61 }
 0x154   :  { %v836_v0 = vadd.f32 %v1139_v63, %v766_v60 }
 0x156   :  { %v839_v1 = vmax.f32 %v836_v0, 0.0 }
 0x158   :  { %1207 = vmatmul.mubr.f32.vlgmr.msra.gmra.mrb[2].mxu1 %v839_v1 }
 0x22b   :  { %v929_v4 = vpop.f32.mrb[2].mxu1 }
 0x22c   :  { %v930_v46 = vadd.f32 %v1033_v25, %v929_v4  ;;  %v1208_v17 = vpop.f32.mrb[3].mxu1 }
 0x22e   :  { %v933_v18 = vmax.f32 %v930_v46, 0.0 }
 0x230   :  { %1242 = vmatmul.mubr.f32.vlgmr.msra.gmra.mrb[4].mxu0 %v933_v18 }
 0x303   :  { %v1023_v29 = vpop.f32.mrb[4].mxu0 }
 0x304   :  { %v1024_v33 = vadd.f32 %v1034_v39, %v1023_v29  ;;  %v1243_v19 = vpop.f32.mrb[5].mxu0 }
 0x306   :  { %1027 = vst [vmem:[%s2179_s7] sm:$0xff] %v1024_v33 }

</bundles_post_ra>
